<compile_context>
chip_gen: v5e
topology: v5e:2x2
jax: 0.10.0
libtpu: 0.0.40
codegen_flags: <defaults>
</compile_context>

<pallas_src>
import functools

import jax
import jax.numpy as jnp
from jax.experimental import pallas as pl
from jax.experimental.pallas import tpu as pltpu


_LINEAR_ACTS = ("GLU", "relu", "sigmoid", "none")
_NO_LINEAR_ACTS = ("GLU_", "relu_", "sigmoid_", "none_")


# ---------------------------------------------------------------------------
# Fused kernel: row-block aggregation matmul + bias + activation epilogue
# ---------------------------------------------------------------------------
def _gcn_kernel(*refs, activation, n_streams, has_bias):
    """One grid step computes output rows [i*tm, i*tm + tm).

    refs = (adj_rows, x_stream_0[, x_stream_1], [bias_0[, bias_1]], out)
      adj_rows  : (tm, 3N)     compute dtype, streamed per grid step
      x_stream  : (3N, B*cp)   compute dtype, fully resident (constant index)
      bias      : (1,  B*cp)   float32
      out       : (tm, B*cp)   float32
    """
    adj_ref = refs[0]
    x_refs = refs[1:1 + n_streams]
    n_bias = n_streams if has_bias else 0
    b_refs = refs[1 + n_streams:1 + n_streams + n_bias]
    o_ref = refs[-1]

    a = adj_ref[...]                                    # (tm, 3N)
    zs = []
    for s in range(n_streams):
        z = jnp.dot(a, x_refs[s][...], preferred_element_type=jnp.float32)
        if has_bias:
            z = z + b_refs[s][...]
        zs.append(z)

    if activation == "GLU":
        out = zs[0] * jax.nn.sigmoid(zs[1])             # sigmoid -> EUP slot
    elif activation == "GLU_":
        out = zs[0] * jax.nn.sigmoid(zs[0])
    elif activation in ("relu", "relu_"):
        out = jnp.maximum(zs[0], 0.0)
    elif activation in ("sigmoid", "sigmoid_"):
        out = jax.nn.sigmoid(zs[0])
    elif activation in ("none", "none_"):
        out = zs[0]
    else:
        raise ValueError(f"unsupported activation {activation!r}")

    o_ref[...] = out.astype(o_ref.dtype)


# ---------------------------------------------------------------------------
# Wrapper
# ---------------------------------------------------------------------------
def _vmem_capacity_bytes(default=64 * 2**20):
    try:
        return int(pltpu.get_tpu_info().vmem_capacity_bytes)
    except Exception:                                   # pragma: no cover
        return default


def _choose_tm(three_n, target):
    """Output-row tile: <= target, multiple of 8 (or the full dim), and split
    into >= 2 grid steps when there is enough work (v7x dual-TensorCore)."""
    if three_n > target:
        return target
    if three_n >= 32:
        half = -(-three_n // 2)          # ceil(3N / 2)
        half = -(-half // 8) * 8         # round up to a multiple of 8
        if half < three_n:
            return half
    return three_n                       # full dim is always a legal block


def gcn_forward(data, adj, weight=None, bias=None, activation="GLU", *,
                compute_dtype=jnp.bfloat16, tm_target=256):
    """Pallas equivalent of Gcn.forward.

    data:   (3N, B, C)  float32
    adj:    (3N, 3N)    float32
    weight: (C_out, C)  float32  (C_out = 2*C' for GLU, C' otherwise); None for
            the linear-free '*_' activation variants.
    bias:   (C_out,)    float32  (None for '*_' variants)
    returns (3N, B, C') float32  (C' = C for '*_' variants)
    """
    three_n, B, C = data.shape
    assert adj.shape == (three_n, three_n), adj.shape

    if activation in _LINEAR_ACTS:
        assert weight is not None and bias is not None
        c_out = weight.shape[0]
        if activation == "GLU":
            assert c_out % 2 == 0, "GLU requires an even output width"
            cp = c_out // 2
            halves = (weight[:cp], weight[cp:])
            bhalves = (bias[:cp], bias[cp:])
        else:
            cp = c_out
            halves = (weight,)
            bhalves = (bias,)
        # Fold the Linear into the data:  adj @ (data @ W_h^T)  (the Linear
        # commutes with the node-axis aggregation).  Small XLA einsum; this is
        # what removes the old kron(I_B, W^T) epilogue entirely.
        x_streams = [
            jnp.einsum("nbc,dc->nbd", data.astype(jnp.float32),
                       w.astype(jnp.float32)).reshape(three_n, B * cp)
            for w in halves
        ]
        b_streams = [jnp.tile(b.astype(jnp.float32), B).reshape(1, B * cp)
                     for b in bhalves]
    elif activation in _NO_LINEAR_ACTS:
        cp = C
        x_streams = [data.reshape(three_n, B * C).astype(jnp.float32)]
        b_streams = []
    else:
        raise ValueError(f"unsupported activation {activation!r}")

    n_streams = len(x_streams)
    bco = B * cp

    # Cast the matmul operands to the compute dtype (bf16 by default); the MXU
    # still accumulates in f32 via preferred_element_type.  Bias stays f32.
    adj_c = adj.astype(compute_dtype)
    x_streams = [x.astype(compute_dtype) for x in x_streams]

    tm = _choose_tm(three_n, tm_target)
    grid = (pl.cdiv(three_n, tm),)       # edge block handled by Pallas padding

    in_specs = [pl.BlockSpec((tm, three_n), lambda i: (i, 0))]      # adj rows
    in_specs += [pl.BlockSpec((three_n, bco), lambda i: (0, 0))     # resident x
                 for _ in x_streams]
    in_specs += [pl.BlockSpec((1, bco), lambda i: (0, 0))           # resident b
                 for _ in b_streams]
    out_specs = pl.BlockSpec((tm, bco), lambda i: (i, 0))           # lane-dense

    c_item = jnp.dtype(compute_dtype).itemsize
    est_vmem = (2 * tm * three_n * c_item                 # adj stream (2 bufs)
                + 2 * n_streams * three_n * bco * c_item  # resident x (worst 2x)
                + 2 * len(b_streams) * bco * 4            # bias
                + 2 * tm * bco * 4                        # output (2 bufs)
                + (n_streams + 1) * tm * bco * 4)         # f32 intermediates
    vmem_cap = _vmem_capacity_bytes()
    vmem_limit = int(min(max(2 * est_vmem, 32 * 2**20), int(0.8 * vmem_cap)))

    cost = pl.CostEstimate(
        flops=2 * n_streams * three_n * three_n * bco,
        transcendentals=(three_n * bco
                         if activation in ("GLU", "GLU_", "sigmoid", "sigmoid_")
                         else 0),
        bytes_accessed=(c_item * (three_n * three_n + n_streams * three_n * bco)
                        + 4 * (three_n * bco + len(b_streams) * bco)),
    )

    kernel = functools.partial(_gcn_kernel, activation=activation,
                               n_streams=n_streams, has_bias=bool(b_streams))

    y_flat = pl.pallas_call(
        kernel,
        out_shape=jax.ShapeDtypeStruct((three_n, bco), jnp.float32),
        grid_spec=pltpu.PrefetchScalarGridSpec(
            num_scalar_prefetch=0,
            grid=grid,
            in_specs=in_specs,
            out_specs=out_specs,
            scratch_shapes=[],
        ),
        compiler_params=pltpu.CompilerParams(
            dimension_semantics=("parallel",),
            vmem_limit_bytes=vmem_limit,
        ),
        cost_estimate=cost,
    )(adj_c, *x_streams, *b_streams)

    return y_flat.reshape(three_n, B, cp)   # free row-major view


# ---------------------------------------------------------------------------
# Pure-JAX reference (mirrors the PyTorch forward semantics exactly)
# ---------------------------------------------------------------------------
def gcn_reference(data, adj, weight, bias, activation="GLU"):
    d = jnp.einsum("nm,mbc->nbc", adj, data)            # batched bmm, shared adj
    if activation in _LINEAR_ACTS:
        z = d @ weight.T + bias
    else:
        z = d
    if activation == "GLU":
        cp = weight.shape[0] // 2
        return z[..., :cp] * jax.nn.sigmoid(z[..., cp:])
    if activation == "GLU_":
        return z * jax.nn.sigmoid(z)
    if activation in ("relu", "relu_"):
        return jnp.maximum(z, 0.0)
    if activation in ("sigmoid", "sigmoid_"):
        return jax.nn.sigmoid(z)
    return z                                            # none / none_


if __name__ == "__main__":
    # module-consistent small shapes: vertices_num N=8 -> 3N=24, B=4, C=8, C'=16
    vertices_num = 8
    three_n = 3 * vertices_num
    B, C, CP = 4, 8, 16

    key = jax.random.PRNGKey(0)
    k_data, k_adj, k_w, k_b = jax.random.split(key, 4)

    data = jax.random.normal(k_data, (three_n, B, C), dtype=jnp.float32)
    adj = jax.random.normal(k_adj, (three_n, three_n), dtype=jnp.float32)
    bound = 1.0 / (C ** 0.5)

    # --- GLU head, f32 matmul path: exact-semantics check (tight tolerance) ---
    w_glu = jax.random.uniform(k_w, (2 * CP, C), jnp.float32, -bound, bound)
    b_glu = jax.random.uniform(k_b, (2 * CP,), jnp.float32, -bound, bound)
    ref_glu = gcn_reference(data, adj, w_glu, b_glu, "GLU")

    out_f32 = jax.block_until_ready(
        gcn_forward(data, adj, w_glu, b_glu, "GLU", compute_dtype=jnp.float32))
    assert out_f32.shape == (three_n, B, CP), out_f32.shape
    assert jnp.allclose(out_f32, ref_glu, atol=2e-4, rtol=2e-4), "GLU f32 mismatch"

    # --- GLU head, default bf16 matmul path (loose tolerance for bf16 inputs) ---
    out_bf16 = jax.block_until_ready(gcn_forward(data, adj, w_glu, b_glu, "GLU"))
    assert out_bf16.shape == (three_n, B, CP), out_bf16.shape
    assert jnp.allclose(out_bf16, ref_glu, atol=1e-1, rtol=1e-1), "GLU bf16 mismatch"

    # --- relu head (single-stream epilogue), f32 ---
    w_r = jax.random.uniform(k_w, (CP, C), jnp.float32, -bound, bound)
    b_r = jax.random.uniform(k_b, (CP,), jnp.float32, -bound, bound)
    out_r = jax.block_until_ready(
        gcn_forward(data, adj, w_r, b_r, "relu", compute_dtype=jnp.float32))
    ref_r = gcn_reference(data, adj, w_r, b_r, "relu")
    assert out_r.shape == (three_n, B, CP), out_r.shape
    assert jnp.allclose(out_r, ref_r, atol=2e-4, rtol=2e-4), "relu mismatch"

    # --- linear-free 'GLU_' variant (no weight/bias), f32 ---
    out_g = jax.block_until_ready(
        gcn_forward(data, adj, activation="GLU_", compute_dtype=jnp.float32))
    ref_g = gcn_reference(data, adj, None, None, "GLU_")
    assert out_g.shape == (three_n, B, C), out_g.shape
    assert jnp.allclose(out_g, ref_g, atol=2e-4, rtol=2e-4), "GLU_ mismatch"

    print("KERNEL_OK")
</pallas_src>

<mosaic_0001>
module attributes {stable_mosaic.version = 11 : i64} {
  func.func @_gcn_kernel(%arg0: i32, %arg1: memref<24x24xf32, #tpu.memory_space<vmem>>, %arg2: memref<24x64xf32, #tpu.memory_space<vmem>>, %arg3: memref<24x64xf32, #tpu.memory_space<vmem>>, %arg4: memref<1x64xf32, #tpu.memory_space<vmem>>, %arg5: memref<1x64xf32, #tpu.memory_space<vmem>>, %arg6: memref<24x64xf32, #tpu.memory_space<vmem>>) attributes {dimension_semantics = [#tpu.dimension_semantics<parallel>], iteration_bounds = array<i64: 1>, scalar_prefetch = 0 : i64, scratch_operands = 0 : i64, tpu.core_type = #tpu.core_type<tc>, window_params = [{transform_indices = @transform_0, window_bounds = array<i64: 24, 24>}, {pipeline_mode = #tpu.pipeline_mode<synchronous>, transform_indices = @transform_1, window_bounds = array<i64: 24, 64>}, {pipeline_mode = #tpu.pipeline_mode<synchronous>, transform_indices = @transform_2, window_bounds = array<i64: 24, 64>}, {pipeline_mode = #tpu.pipeline_mode<synchronous>, transform_indices = @transform_3, window_bounds = array<i64: 1, 64>}, {pipeline_mode = #tpu.pipeline_mode<synchronous>, transform_indices = @transform_4, window_bounds = array<i64: 1, 64>}, {transform_indices = @transform_5, window_bounds = array<i64: 24, 64>}]} {
    %c0 = arith.constant 0 : index
    %c0_0 = arith.constant 0 : index
    %0 = vector.load %arg1[%c0, %c0_0] : memref<24x24xf32, #tpu.memory_space<vmem>>, vector<24x24xf32>
    %c0_1 = arith.constant 0 : index
    %c0_2 = arith.constant 0 : index
    %1 = vector.load %arg2[%c0_1, %c0_2] : memref<24x64xf32, #tpu.memory_space<vmem>>, vector<24x64xf32>
    %cst = arith.constant dense<0.000000e+00> : vector<24x64xf32>
    %2 = tpu.matmul %0, %1, %cst {dimension_numbers = #tpu.dot_dimension_numbers<[1], [0], [0], [1], [0, 0, 1, 1], [], []>} : vector<24x24xf32>, vector<24x64xf32>, vector<24x64xf32> -> vector<24x64xf32>
    %c0_3 = arith.constant 0 : index
    %c0_4 = arith.constant 0 : index
    %3 = vector.load %arg4[%c0_3, %c0_4] : memref<1x64xf32, #tpu.memory_space<vmem>>, vector<1x64xf32>
    %4 = vector.broadcast %3 : vector<1x64xf32> to vector<24x64xf32>
    %5 = arith.addf %2, %4 : vector<24x64xf32>
    %c0_5 = arith.constant 0 : index
    %c0_6 = arith.constant 0 : index
    %6 = vector.load %arg3[%c0_5, %c0_6] : memref<24x64xf32, #tpu.memory_space<vmem>>, vector<24x64xf32>
    %cst_7 = arith.constant dense<0.000000e+00> : vector<24x64xf32>
    %7 = tpu.matmul %0, %6, %cst_7 {dimension_numbers = #tpu.dot_dimension_numbers<[1], [0], [0], [1], [0, 0, 1, 1], [], []>} : vector<24x24xf32>, vector<24x64xf32>, vector<24x64xf32> -> vector<24x64xf32>
    %c0_8 = arith.constant 0 : index
    %c0_9 = arith.constant 0 : index
    %8 = vector.load %arg5[%c0_8, %c0_9] : memref<1x64xf32, #tpu.memory_space<vmem>>, vector<1x64xf32>
    %9 = vector.broadcast %8 : vector<1x64xf32> to vector<24x64xf32>
    %10 = arith.addf %7, %9 : vector<24x64xf32>
    %11 = arith.negf %10 : vector<24x64xf32>
    %12 = math.exp %11 : vector<24x64xf32>
    %cst_10 = arith.constant 1.000000e+00 : f32
    %13 = vector.broadcast %cst_10 : f32 to vector<24x64xf32>
    %14 = arith.addf %13, %12 : vector<24x64xf32>
    %15 = arith.divf %13, %14 : vector<24x64xf32>
    %16 = arith.mulf %5, %15 : vector<24x64xf32>
    %c0_11 = arith.constant 0 : index
    %c0_12 = arith.constant 0 : index
    %17 = vector.load %arg6[%c0_11, %c0_12] : memref<24x64xf32, #tpu.memory_space<vmem>>, vector<24x64xf32>
    tpu.vector_store %arg6[%c0_11, %c0_12], %16 {strides = array<i32>} : memref<24x64xf32, #tpu.memory_space<vmem>>, vector<24x64xf32>,
    return
  }
  func.func @transform_0(%arg0: i32) -> (i32, i32) {
    %c0_i32 = arith.constant 0 : i32
    %c0_i32_0 = arith.constant 0 : i32
    return %arg0, %c0_i32 : i32, i32
  }
  func.func @transform_1(%arg0: i32) -> (i32, i32) {
    %c0_i32 = arith.constant 0 : i32
    %c0_i32_0 = arith.constant 0 : i32
    %c0_i32_1 = arith.constant 0 : i32
    return %c0_i32, %c0_i32_0 : i32, i32
  }
  func.func @transform_2(%arg0: i32) -> (i32, i32) {
    %c0_i32 = arith.constant 0 : i32
    %c0_i32_0 = arith.constant 0 : i32
    %c0_i32_1 = arith.constant 0 : i32
    return %c0_i32, %c0_i32_0 : i32, i32
  }
  func.func @transform_3(%arg0: i32) -> (i32, i32) {
    %c0_i32 = arith.constant 0 : i32
    %c0_i32_0 = arith.constant 0 : i32
    %c0_i32_1 = arith.constant 0 : i32
    return %c0_i32, %c0_i32_0 : i32, i32
  }
  func.func @transform_4(%arg0: i32) -> (i32, i32) {
    %c0_i32 = arith.constant 0 : i32
    %c0_i32_0 = arith.constant 0 : i32
    %c0_i32_1 = arith.constant 0 : i32
    return %c0_i32, %c0_i32_0 : i32, i32
  }
  func.func @transform_5(%arg0: i32) -> (i32, i32) {
    %c0_i32 = arith.constant 0 : i32
    %c0_i32_0 = arith.constant 0 : i32
    return %arg0, %c0_i32 : i32, i32
  }
}

</mosaic_0001>

<bundles_post_ra>
// kernel: tpu_custom_call.1
= control target key start
LH: loop header
LB: loop body
LE: loop exit
PB: predicated region body
PF: predicated region fallthrough
CT: control target
= control target key end

     0   :  { %10 = vsyncpa [#allocation3], 0  ;;  %s443_s0 = inlined_call_operand.hbm [shape: f32[24,24], index: 0, kind: input, shape index: {}]   ;;  %s444_s1 = inlined_call_operand.hbm [shape: f32[24,64], index: 1, kind: input, shape index: {}]   ;;  %s445_s2 = inlined_call_operand.hbm [shape: f32[24,64], index: 2, kind: input, shape index: {}]   ;;  %s446_s3 = inlined_call_operand.vmem [shape: f32[1,64], index: 3, kind: input, shape index: {}]   ;;  %s447_s4 = inlined_call_operand.vmem [shape: f32[1,64], index: 4, kind: input, shape index: {}]   ;;  %s448_s5 = inlined_call_operand.hbm [shape: f32[24,64], index: 5, kind: output, shape index: {}]  }
   0x1   :  { %11 = vsyncpa [#allocation6], 0 }
   0x2   :  { %12 = vsyncpa [#allocation4], 0  ;;  %s30_s20 = sshll.u32 %s444_s1, 4  ;;  %s368_s21 = smov [#allocation5]   ;;  %s31_s20 = int_to_ptr.hbm [resolvable:$true] %s30_s20 }
   0x3   :  { %s32_s22 = sshll.u32 %s368_s21, 4  ;;  %s17_s25 = sshll.u32 %s443_s0, 4  ;;  %s33_s22 = int_to_ptr.vmem [resolvable:$true] %s32_s22  ;;  %s18_s25 = int_to_ptr.hbm [resolvable:$true] %s17_s25 }
   0x4   :  { %s369_s26 = smov 128   ;;  %s370_s27 = smov 8  }
   0x5   :  { %38 = dma.hbm_to_vmem [thread:$0]  %s31_s20, 384, %s33_s22, [#allocation6], %s369_s26, %s369_s26, %s370_s27  }
   0x6   :  { %s371_s28 = smov [#allocation2]   ;;  %s43_s1 = sshll.u32 %s445_s2, 4  ;;  %s44_s1 = int_to_ptr.hbm [resolvable:$true] %s43_s1 }
   0x7   :  { %s19_s29 = sshll.u32 %s371_s28, 4  ;;  %s372_s0 = smov [#allocation7]   ;;  %s20_s29 = int_to_ptr.vmem [resolvable:$true] %s19_s29 }
   0x8   :  { %25 = dma.hbm_to_vmem [thread:$0]  %s18_s25, 384, %s20_s29, [#allocation3], %s369_s26, %s369_s26, %s370_s27  }
   0x9   :  { %s45_s7 = sshll.u32 %s372_s0, 4  ;;  %s46_s7 = int_to_ptr.vmem [resolvable:$true] %s45_s7 }
   0xa   :  { %51 = dma.hbm_to_vmem [thread:$0]  %s44_s1, 384, %s46_s7, [#allocation6], %s369_s26, %s369_s26, %s370_s27  }
   0xb   :  { %362 = dma.done.wait [#allocation3], 384  }
   0xc   :  { %363 = vsyncadd [#allocation3], 4294966912 }
   0xd   :  { %364 = dma.done.wait [#allocation6], 768  }
   0xe   :  { %365 = vsyncadd [#allocation6], 4294966528  ;;  %v116_v0 = vld [vmem:[#allocation7 + $0x10] sm:$0xff]  ;;  %v115_v1 = vld [vmem:[#allocation7 + $0x8] sm:$0xff]  ;;  %vm78_vm0 = vcmask 195584   ;;  %vm207_vm5 = vcmask 523264  }
   0xf   :  { %243 = vmatpush.msra.mxu3 %v116_v0  ;;  %134 = vmatpush.msra.mxu1 %v116_v0  ;;  %v114_v2 = vld [vmem:[#allocation7] sm:$0xff]  ;;  %v69_v3 = vld [vmem:[#allocation2 + $0x8] sm:$0xff]  ;;  %v68_v5 = vld [vmem:[#allocation2] sm:$0xff]  ;;  %s217_s13 = sshll.u32 %s448_s5, 4  ;;  %s218_s13 = int_to_ptr.hbm [resolvable:$true] %s217_s13 }
  0x10   :  { %v73_v4 = vld [vmem:[#allocation5 + $0x10] sm:$0xff]  ;;  %v72_v6 = vld [vmem:[#allocation5 + $0x8] sm:$0xff]  ;;  %v71_v7 = vld [vmem:[#allocation5] sm:$0xff] }
  0x11   :  { %244 = vmatpush.msra.mxu3 %v115_v1  ;;  %135 = vmatpush.msra.mxu1 %v115_v1  ;;  %v70_v8 = vld [vmem:[#allocation2 + $0x10] sm:$0xff]  ;;  %v252_v9 = vld [vmem:[%s447_s4] ss:$0 sm:$0xff] }
  0x12   :  { %240 = vmatpush.msra.mxu2 %v73_v4  ;;  %101 = vmatpush.msra.mxu0 %v73_v4  ;;  %v253_v26 = vld [vmem:[%s446_s3] ss:$0 sm:$0xff]  ;;  %s373_s3 = smov [#allocation8]  }
  0x13   :  { %245 = vmatpush.msra.mxu3 %v114_v2  ;;  %136 = vmatpush.msra.mxu1 %v114_v2  ;;  %s215_s10 = sshll.u32 %s373_s3, 4  ;;  %s216_s10 = int_to_ptr.vmem [resolvable:$true] %s215_s10 }
  0x14   :  { %235 = vmatmul.msk.f32.vlgmr.msra.gmra.mxu3 %vm78_vm0, %v69_v3  ;;  %234 = vmatmul.msk.f32.vlgmr.msra.gmra.mxu1 %vm78_vm0, %v68_v5 }
  0x15   :  { %241 = vmatpush.msra.mxu2 %v72_v6  ;;  %102 = vmatpush.msra.mxu0 %v72_v6 }
  0x17   :  { %242 = vmatpush.msra.mxu2 %v71_v7  ;;  %103 = vmatpush.msra.mxu0 %v71_v7 }
  0x18   :  { %232 = vmatmul.msk.f32.vlgmr.msra.gmra.mxu2 %vm78_vm0, %v69_v3  ;;  %231 = vmatmul.msk.f32.vlgmr.msra.gmra.mxu0 %vm78_vm0, %v68_v5 }
  0x1c   :  { %236 = vmatmul.msk.f32.gmra.mxu3 %vm78_vm0, %v70_v8 }
  0x20   :  { %233 = vmatmul.msk.f32.gmra.mxu2 %vm78_vm0, %v70_v8 }
  0x91   :  { %v138_v10 = vpop.f32.mrf.mxu1 }
  0x92   :  { %v139_v11 = vadd.f32 %v252_v9, %v138_v10 }
  0x94   :  { %v237_v12 = vmul.f32 -1.442695, %v139_v11 }
  0x95   :  { %v105_v29 = vpop.f32.mrf.mxu0 }
  0x96   :  { %254 = vpow2.f32 %v237_v12  ;;  %v106_v35 = vadd.f32 %v253_v26, %v105_v29 }
  0x97   :  { %v141_v13 = vpop.f32.mrf.mxu3 }
  0x98   :  { %v142_v14 = vadd.f32 %v252_v9, %v141_v13 }
  0x9a   :  { %v238_v15 = vmul.f32 -1.442695, %v142_v14 }
  0x9b   :  { %v108_v38 = vpop.f32.mrf.mxu2 }
  0x9c   :  { %v255_v16 = vpop.eup %254  ;;  %256 = vpow2.f32 %v238_v15  ;;  %v109_v46 = vadd.f32 %v253_v26, %v108_v38 }
  0x9d   :  { %v156_v17 = vadd.f32 1.0, %v255_v16 }
  0x9f   :  { %258 = vrcp.f32 %v156_v17  ;;  %v144_v18 = vpop.f32.mrf.mxu3  ;;  %v170_v25 = vand.u32 2147483648, %v156_v17  ;;  %vm164_vm1 = vweird.f32 %v156_v17  ;;  %v168_v28 = vand.u32 2147483647, %v156_v17 }
  0xa0   :  { %v145_v19 = vadd.f32 %v252_v9, %v144_v18 }
  0xa1   :  { %v171_v34 = vor.u32 1.1754944e-38, %v170_v25  ;;  %vm169_vm4 = vcmp.eq.f32.partialorder %v168_v28, 8.507059e+37 }
  0xa2   :  { %v257_v20 = vpop.eup %256  ;;  %v239_v21 = vmul.f32 -1.442695, %v145_v19 }
  0xa3   :  { %v157_v22 = vadd.f32 1.0, %v257_v20  ;;  %v111_v55 = vpop.f32.mrf.mxu2 }
  0xa4   :  { %260 = vpow2.f32 %v239_v21  ;;  %v112_v59 = vadd.f32 %v253_v26, %v111_v55 }
  0xa5   :  { %v259_v23 = vpop.eup %258  ;;  %262 = vrcp.f32 %v157_v22  ;;  %v185_v42 = vand.u32 2147483648, %v157_v22  ;;  %v183_v45 = vand.u32 2147483647, %v157_v22  ;;  %vm179_vm7 = vweird.f32 %v157_v22 }
  0xa6   :  { %v160_v24 = vmul.f32 %v259_v23, %v156_v17  ;;  %vm165_vm2 = vweird.f32 %v259_v23 }
  0xa7   :  { %vm166_vm3 = vmor %vm164_vm1, %vm165_vm2  ;;  %v186_v49 = vor.u32 1.1754944e-38, %v185_v42  ;;  %vm184_vm9 = vcmp.eq.f32.partialorder %v183_v45, 8.507059e+37 }
  0xa8   :  { %v161_v27 = vsub.f32 1.0, %v160_v24 }
  0xaa   :  { %v261_v30 = vpop.eup %260  ;;  %v162_v31 = vmul.f32 %v259_v23, %v161_v27 }
  0xab   :  { %v263_v32 = vpop.eup %262  ;;  %v158_v33 = vadd.f32 1.0, %v261_v30 }
  0xac   :  { %v163_v36 = vadd.f32 %v259_v23, %v162_v31  ;;  %v175_v37 = vmul.f32 %v263_v32, %v157_v22  ;;  %vm180_vm6 = vweird.f32 %v263_v32 }
  0xad   :  { %264 = vrcp.f32 %v158_v33  ;;  %vm181_vm8 = vmor %vm179_vm7, %vm180_vm6  ;;  %v200_v56 = vand.u32 2147483648, %v158_v33  ;;  %v198_v58 = vand.u32 2147483647, %v158_v33  ;;  %vm194_vm11 = vweird.f32 %v158_v33 }
  0xae   :  { %v167_v39 = vsel %vm166_vm3, %v259_v23, %v163_v36  ;;  %v176_v40 = vsub.f32 1.0, %v175_v37 }
  0xaf   :  { %v172_v41 = vsel %vm169_vm4, %v171_v34, %v167_v39  ;;  %v201_v61 = vor.u32 1.1754944e-38, %v200_v56  ;;  %vm199_vm13 = vcmp.eq.f32.partialorder %v198_v58, 8.507059e+37 }
  0xb0   :  { %v204_v43 = vmul.f32 %v172_v41, %v106_v35  ;;  %v177_v44 = vmul.f32 %v263_v32, %v176_v40 }
  0xb2   :  { %208 = vst.msk [vmem:[#allocation8] sm:$0xff] %vm207_vm5, %v204_v43  ;;  %v178_v47 = vadd.f32 %v263_v32, %v177_v44 }
  0xb3   :  { %v265_v48 = vpop.eup %264 }
  0xb4   :  { %v182_v50 = vsel %vm181_vm8, %v263_v32, %v178_v47  ;;  %v190_v51 = vmul.f32 %v265_v48, %v158_v33  ;;  %vm195_vm10 = vweird.f32 %v265_v48 }
  0xb5   :  { %v187_v52 = vsel %vm184_vm9, %v186_v49, %v182_v50  ;;  %vm196_vm12 = vmor %vm194_vm11, %vm195_vm10 }
  0xb6   :  { %v205_v53 = vmul.f32 %v187_v52, %v109_v46  ;;  %v191_v54 = vsub.f32 1.0, %v190_v51 }
  0xb8   :  { %209 = vst.msk [vmem:[#allocation8 + $0x8] sm:$0xff] %vm207_vm5, %v205_v53  ;;  %v192_v57 = vmul.f32 %v265_v48, %v191_v54 }
  0xba   :  { %v193_v60 = vadd.f32 %v265_v48, %v192_v57 }
  0xbc   :  { %v197_v62 = vsel %vm196_vm12, %v265_v48, %v193_v60 }
  0xbd   :  { %v202_v63 = vsel %vm199_vm13, %v201_v61, %v197_v62 }
  0xbe   :  { %v206_v0 = vmul.f32 %v202_v63, %v112_v59 }
  0xc0   :  { %210 = vst.msk [vmem:[#allocation8 + $0x10] sm:$0xff] %vm207_vm5, %v206_v0 }
  0xc1   :  { %223 = dma.vmem_to_hbm [thread:$0]  %s216_s10, 384, %s218_s13, [#allocation4], %s369_s26, %s369_s26, %s370_s27  }
  0xc2   :  { %366 = dma.done.wait [#allocation4], 384  }
  0xc3   :  { %367 = vsyncadd [#allocation4], 4294966912 }
  0xc4   :  { %228 = vsyncpa [#allocation3], 1 }
  0xc5   :  { %229 = vsyncpa [#allocation6], 1 }
  0xc6   :  { %230 = vsyncpa [#allocation4], 1 }

</bundles_post_ra>
